<compile_context>
chip_gen: v6e
topology: v6e:2x2x1
jax: 0.10.0
libtpu: 0.0.40
codegen_flags: <defaults>
</compile_context>

<pallas_src>
import jax
import jax.numpy as jnp
from jax.experimental import pallas as pl
from jax.experimental.pallas import tpu as pltpu


def mlp_kernel(x_ref,
               w1_ref, b1_ref,
               w2_ref, b2_ref,
               w3_ref, b3_ref,
               w4_ref, b4_ref,
               o_ref):
    x = x_ref[...]                                             # (TB, IN) bf16

    # lr1 + ReLU   (dropout = identity in eval mode)
    h1 = jnp.dot(x, w1_ref[...], preferred_element_type=jnp.float32) + b1_ref[...]
    h1 = jnp.maximum(h1, 0.0)

    # lr2 + ReLU   (dropout = identity in eval mode)
    h2 = jnp.dot(h1.astype(jnp.bfloat16), w2_ref[...],
                 preferred_element_type=jnp.float32) + b2_ref[...]
    h2 = jnp.maximum(h2, 0.0)

    # lr3 + ReLU
    h3 = jnp.dot(h2.astype(jnp.bfloat16), w3_ref[...],
                 preferred_element_type=jnp.float32) + b3_ref[...]
    h3 = jnp.maximum(h3, 0.0)

    # lr4 (out_features == 1): VPU multiply + lane reduce instead of an MXU pass
    # w4_ref is (1, 16) f32, broadcast across sublanes.
    h4 = jnp.sum(h3 * w4_ref[...], axis=-1, keepdims=True) + b4_ref[...]

    # Sigmoid via tanh: EUP-friendly, no VPU divide, stable for large |h4|.
    o_ref[...] = (0.5 * (jnp.tanh(0.5 * h4) + 1.0)).astype(o_ref.dtype)


def _round_up(n, m):
    return ((n + m - 1) // m) * m


def net_forward(x, params, *, tb=256):
    """x: (batch, input_size) f32. params: PyTorch-layout (out,in) weights, (1,out) biases."""
    (w1, b1), (w2, b2), (w3, b3), (w4, b4) = params
    batch, in_f = x.shape

    # Pre-transpose wide weights to (in, out) and cast MXU operands to bf16.
    w1t = w1.T.astype(jnp.bfloat16)          # (in, 64)
    w2t = w2.T.astype(jnp.bfloat16)          # (64, 32)
    w3t = w3.T.astype(jnp.bfloat16)          # (32, 16)
    w4r = w4.astype(jnp.float32)             # (1, 16)  -- used on the VPU, stays f32

    # Batch tile: multiple of 8, capped at the (rounded-up) batch.
    tb = min(tb, _round_up(batch, 8))
    padded = _round_up(batch, tb)
    if padded != batch:
        x = jnp.pad(x, ((0, padded - batch), (0, 0)))
    x_bf = x.astype(jnp.bfloat16)

    grid = (padded // tb,)
    rep = lambda a: pl.BlockSpec(a.shape, lambda i: (0, 0))   # whole array, every step

    out = pl.pallas_call(
        mlp_kernel,
        out_shape=jax.ShapeDtypeStruct((padded, 1), jnp.float32),
        grid_spec=pltpu.PrefetchScalarGridSpec(
            num_scalar_prefetch=0,
            grid=grid,
            in_specs=[pl.BlockSpec((tb, in_f), lambda i: (i, 0)),
                      rep(w1t), rep(b1),
                      rep(w2t), rep(b2),
                      rep(w3t), rep(b3),
                      rep(w4r), rep(b4)],
            out_specs=pl.BlockSpec((tb, 1), lambda i: (i, 0)),
        ),
        compiler_params=pltpu.CompilerParams(
            dimension_semantics=("parallel",)),
    )(x_bf, w1t, b1, w2t, b2, w3t, b3, w4r, b4)

    return out[:batch]


def init_params(key, input_size):
    """Deterministic PyTorch-style (uniform +/- 1/sqrt(fan_in)) init."""
    sizes = [(64, input_size), (32, 64), (16, 32), (1, 16)]
    params = []
    for (out_f, in_f) in sizes:
        key, kw, kb = jax.random.split(key, 3)
        bound = 1.0 / jnp.sqrt(in_f)
        w = jax.random.uniform(kw, (out_f, in_f), jnp.float32, -bound, bound)
        b = jax.random.uniform(kb, (out_f,), jnp.float32, -bound, bound)
        # keep bias 2D (1, out_f) so it broadcasts cleanly on TPU lanes
        params.append((w, b.reshape(1, out_f)))
    return params


if __name__ == "__main__":
    key = jax.random.PRNGKey(0)
    input_size = 32
    batch = 512          # 2 grid steps of TB=256 -> exercises the tiled, parallel path

    kx, kp = jax.random.split(key)
    x = jax.random.normal(kx, (batch, input_size), jnp.float32)
    params = init_params(kp, input_size)

    # TODO(synk): nn.Dropout(0.3) is modeled in eval mode (identity); training-mode
    # stochastic dropout would use pltpu.prng_seed/prng_random_bits.
    out = net_forward(x, params)
    out = jax.block_until_ready(out)

    # sanity: shape (batch, 1), sigmoid range
    assert out.shape == (batch, 1)
    assert bool(jnp.all((out >= 0.0) & (out <= 1.0)))

    # cross-check against a pure-JAX f32 reference (kernel matmuls run in bf16,
    # so tolerances are relaxed accordingly)
    def ref(x, params):
        (w1, b1), (w2, b2), (w3, b3), (w4, b4) = params
        h = jnp.maximum(x @ w1.T + b1, 0.0)
        h = jnp.maximum(h @ w2.T + b2, 0.0)
        h = jnp.maximum(h @ w3.T + b3, 0.0)
        return jax.nn.sigmoid(h @ w4.T + b4)

    assert jnp.allclose(out, ref(x, params), atol=2e-2, rtol=2e-2)

    print("KERNEL_OK")
</pallas_src>

<mosaic_0001>
module attributes {stable_mosaic.version = 11 : i64} {
  func.func @mlp_kernel(%arg0: i32, %arg1: memref<256x32xbf16, #tpu.memory_space<vmem>>, %arg2: memref<32x64xbf16, #tpu.memory_space<vmem>>, %arg3: memref<1x64xf32, #tpu.memory_space<vmem>>, %arg4: memref<64x32xbf16, #tpu.memory_space<vmem>>, %arg5: memref<1x32xf32, #tpu.memory_space<vmem>>, %arg6: memref<32x16xbf16, #tpu.memory_space<vmem>>, %arg7: memref<1x16xf32, #tpu.memory_space<vmem>>, %arg8: memref<1x16xf32, #tpu.memory_space<vmem>>, %arg9: memref<1x1xf32, #tpu.memory_space<vmem>>, %arg10: memref<256x1xf32, #tpu.memory_space<vmem>>) attributes {dimension_semantics = [#tpu.dimension_semantics<parallel>], iteration_bounds = array<i64: 2>, scalar_prefetch = 0 : i64, scratch_operands = 0 : i64, tpu.core_type = #tpu.core_type<tc>, window_params = [{transform_indices = @transform_0, window_bounds = array<i64: 256, 32>}, {pipeline_mode = #tpu.pipeline_mode<synchronous>, transform_indices = @transform_1, window_bounds = array<i64: 32, 64>}, {pipeline_mode = #tpu.pipeline_mode<synchronous>, transform_indices = @transform_2, window_bounds = array<i64: 1, 64>}, {pipeline_mode = #tpu.pipeline_mode<synchronous>, transform_indices = @transform_3, window_bounds = array<i64: 64, 32>}, {pipeline_mode = #tpu.pipeline_mode<synchronous>, transform_indices = @transform_4, window_bounds = array<i64: 1, 32>}, {pipeline_mode = #tpu.pipeline_mode<synchronous>, transform_indices = @transform_5, window_bounds = array<i64: 32, 16>}, {pipeline_mode = #tpu.pipeline_mode<synchronous>, transform_indices = @transform_6, window_bounds = array<i64: 1, 16>}, {pipeline_mode = #tpu.pipeline_mode<synchronous>, transform_indices = @transform_7, window_bounds = array<i64: 1, 16>}, {pipeline_mode = #tpu.pipeline_mode<synchronous>, transform_indices = @transform_8, window_bounds = array<i64: 1, 1>}, {transform_indices = @transform_9, window_bounds = array<i64: 256, 1>}]} {
    %c0 = arith.constant 0 : index
    %c0_0 = arith.constant 0 : index
    %0 = vector.load %arg1[%c0, %c0_0] : memref<256x32xbf16, #tpu.memory_space<vmem>>, vector<256x32xbf16>
    %c0_1 = arith.constant 0 : index
    %c0_2 = arith.constant 0 : index
    %1 = vector.load %arg2[%c0_1, %c0_2] : memref<32x64xbf16, #tpu.memory_space<vmem>>, vector<32x64xbf16>
    %cst = arith.constant dense<0.000000e+00> : vector<256x64xf32>
    %2 = tpu.matmul %0, %1, %cst {dimension_numbers = #tpu.dot_dimension_numbers<[1], [0], [0], [1], [0, 0, 1, 1], [], []>} : vector<256x32xbf16>, vector<32x64xbf16>, vector<256x64xf32> -> vector<256x64xf32>
    %c0_3 = arith.constant 0 : index
    %c0_4 = arith.constant 0 : index
    %3 = vector.load %arg3[%c0_3, %c0_4] : memref<1x64xf32, #tpu.memory_space<vmem>>, vector<1x64xf32>
    %4 = vector.broadcast %3 : vector<1x64xf32> to vector<256x64xf32>
    %5 = arith.addf %2, %4 : vector<256x64xf32>
    %cst_5 = arith.constant 0.000000e+00 : f32
    %6 = vector.broadcast %cst_5 : f32 to vector<256x64xf32>
    %7 = arith.maximumf %5, %6 : vector<256x64xf32>
    %8 = arith.truncf %7 : vector<256x64xf32> to vector<256x64xbf16>
    %c0_6 = arith.constant 0 : index
    %c0_7 = arith.constant 0 : index
    %9 = vector.load %arg4[%c0_6, %c0_7] : memref<64x32xbf16, #tpu.memory_space<vmem>>, vector<64x32xbf16>
    %cst_8 = arith.constant dense<0.000000e+00> : vector<256x32xf32>
    %10 = tpu.matmul %8, %9, %cst_8 {dimension_numbers = #tpu.dot_dimension_numbers<[1], [0], [0], [1], [0, 0, 1, 1], [], []>} : vector<256x64xbf16>, vector<64x32xbf16>, vector<256x32xf32> -> vector<256x32xf32>
    %c0_9 = arith.constant 0 : index
    %c0_10 = arith.constant 0 : index
    %11 = vector.load %arg5[%c0_9, %c0_10] : memref<1x32xf32, #tpu.memory_space<vmem>>, vector<1x32xf32>
    %12 = vector.broadcast %11 : vector<1x32xf32> to vector<256x32xf32>
    %13 = arith.addf %10, %12 : vector<256x32xf32>
    %cst_11 = arith.constant 0.000000e+00 : f32
    %14 = vector.broadcast %cst_11 : f32 to vector<256x32xf32>
    %15 = arith.maximumf %13, %14 : vector<256x32xf32>
    %16 = arith.truncf %15 : vector<256x32xf32> to vector<256x32xbf16>
    %c0_12 = arith.constant 0 : index
    %c0_13 = arith.constant 0 : index
    %17 = vector.load %arg6[%c0_12, %c0_13] : memref<32x16xbf16, #tpu.memory_space<vmem>>, vector<32x16xbf16>
    %cst_14 = arith.constant dense<0.000000e+00> : vector<256x16xf32>
    %18 = tpu.matmul %16, %17, %cst_14 {dimension_numbers = #tpu.dot_dimension_numbers<[1], [0], [0], [1], [0, 0, 1, 1], [], []>} : vector<256x32xbf16>, vector<32x16xbf16>, vector<256x16xf32> -> vector<256x16xf32>
    %c0_15 = arith.constant 0 : index
    %c0_16 = arith.constant 0 : index
    %19 = vector.load %arg7[%c0_15, %c0_16] : memref<1x16xf32, #tpu.memory_space<vmem>>, vector<1x16xf32>
    %20 = vector.broadcast %19 : vector<1x16xf32> to vector<256x16xf32>
    %21 = arith.addf %18, %20 : vector<256x16xf32>
    %cst_17 = arith.constant 0.000000e+00 : f32
    %22 = vector.broadcast %cst_17 : f32 to vector<256x16xf32>
    %23 = arith.maximumf %21, %22 : vector<256x16xf32>
    %c0_18 = arith.constant 0 : index
    %c0_19 = arith.constant 0 : index
    %24 = vector.load %arg8[%c0_18, %c0_19] : memref<1x16xf32, #tpu.memory_space<vmem>>, vector<1x16xf32>
    %25 = vector.broadcast %24 : vector<1x16xf32> to vector<256x16xf32>
    %26 = arith.mulf %23, %25 : vector<256x16xf32>
    %cst_20 = arith.constant dense<0.000000e+00> : vector<256xf32>
    %27 = vector.multi_reduction <add>, %26, %cst_20 [1] : vector<256x16xf32> to vector<256xf32>
    %28 = vector.shape_cast %27 : vector<256xf32> to vector<256x1xf32>
    %c0_21 = arith.constant 0 : index
    %c0_22 = arith.constant 0 : index
    %29 = vector.load %arg9[%c0_21, %c0_22] : memref<1x1xf32, #tpu.memory_space<vmem>>, vector<1x1xf32>
    %30 = vector.broadcast %29 : vector<1x1xf32> to vector<256x1xf32>
    %31 = arith.addf %28, %30 : vector<256x1xf32>
    %cst_23 = arith.constant 5.000000e-01 : f32
    %32 = vector.broadcast %cst_23 : f32 to vector<256x1xf32>
    %33 = arith.mulf %32, %31 : vector<256x1xf32>
    %34 = math.tanh %33 : vector<256x1xf32>
    %cst_24 = arith.constant 1.000000e+00 : f32
    %35 = vector.broadcast %cst_24 : f32 to vector<256x1xf32>
    %36 = arith.addf %34, %35 : vector<256x1xf32>
    %cst_25 = arith.constant 5.000000e-01 : f32
    %37 = vector.broadcast %cst_25 : f32 to vector<256x1xf32>
    %38 = arith.mulf %37, %36 : vector<256x1xf32>
    %c0_26 = arith.constant 0 : index
    %c0_27 = arith.constant 0 : index
    %39 = vector.load %arg10[%c0_26, %c0_27] : memref<256x1xf32, #tpu.memory_space<vmem>>, vector<256x1xf32>
    tpu.vector_store %arg10[%c0_26, %c0_27], %38 {strides = array<i32>} : memref<256x1xf32, #tpu.memory_space<vmem>>, vector<256x1xf32>,
    return
  }
  func.func @transform_0(%arg0: i32) -> (i32, i32) {
    %c0_i32 = arith.constant 0 : i32
    %c0_i32_0 = arith.constant 0 : i32
    return %arg0, %c0_i32 : i32, i32
  }
  func.func @transform_1(%arg0: i32) -> (i32, i32) {
    %c0_i32 = arith.constant 0 : i32
    %c0_i32_0 = arith.constant 0 : i32
    %c0_i32_1 = arith.constant 0 : i32
    return %c0_i32, %c0_i32_0 : i32, i32
  }
  func.func @transform_2(%arg0: i32) -> (i32, i32) {
    %c0_i32 = arith.constant 0 : i32
    %c0_i32_0 = arith.constant 0 : i32
    %c0_i32_1 = arith.constant 0 : i32
    return %c0_i32, %c0_i32_0 : i32, i32
  }
  func.func @transform_3(%arg0: i32) -> (i32, i32) {
    %c0_i32 = arith.constant 0 : i32
    %c0_i32_0 = arith.constant 0 : i32
    %c0_i32_1 = arith.constant 0 : i32
    return %c0_i32, %c0_i32_0 : i32, i32
  }
  func.func @transform_4(%arg0: i32) -> (i32, i32) {
    %c0_i32 = arith.constant 0 : i32
    %c0_i32_0 = arith.constant 0 : i32
    %c0_i32_1 = arith.constant 0 : i32
    return %c0_i32, %c0_i32_0 : i32, i32
  }
  func.func @transform_5(%arg0: i32) -> (i32, i32) {
    %c0_i32 = arith.constant 0 : i32
    %c0_i32_0 = arith.constant 0 : i32
    %c0_i32_1 = arith.constant 0 : i32
    return %c0_i32, %c0_i32_0 : i32, i32
  }
  func.func @transform_6(%arg0: i32) -> (i32, i32) {
    %c0_i32 = arith.constant 0 : i32
    %c0_i32_0 = arith.constant 0 : i32
    %c0_i32_1 = arith.constant 0 : i32
    return %c0_i32, %c0_i32_0 : i32, i32
  }
  func.func @transform_7(%arg0: i32) -> (i32, i32) {
    %c0_i32 = arith.constant 0 : i32
    %c0_i32_0 = arith.constant 0 : i32
    %c0_i32_1 = arith.constant 0 : i32
    return %c0_i32, %c0_i32_0 : i32, i32
  }
  func.func @transform_8(%arg0: i32) -> (i32, i32) {
    %c0_i32 = arith.constant 0 : i32
    %c0_i32_0 = arith.constant 0 : i32
    %c0_i32_1 = arith.constant 0 : i32
    return %c0_i32, %c0_i32_0 : i32, i32
  }
  func.func @transform_9(%arg0: i32) -> (i32, i32) {
    %c0_i32 = arith.constant 0 : i32
    %c0_i32_0 = arith.constant 0 : i32
    return %arg0, %c0_i32 : i32, i32
  }
}

</mosaic_0001>

<bundles_post_ra>
// kernel: tpu_custom_call.1
= control target key start
LH: loop header
LB: loop body
LE: loop exit
PB: predicated region body
PF: predicated region fallthrough
CT: control target
= control target key end

     0   :  { %s2102_s11 = smov 0   ;;  %s2502_s0 = inlined_call_operand.vmem [shape: bf16[512,32], index: 0, kind: input, shape index: {}]   ;;  %s2503_s1 = inlined_call_operand.vmem [shape: bf16[32,64], index: 1, kind: input, shape index: {}]   ;;  %s2504_s2 = inlined_call_operand.vmem [shape: f32[1,64], index: 2, kind: input, shape index: {}]   ;;  %s2505_s3 = inlined_call_operand.vmem [shape: bf16[64,32], index: 3, kind: input, shape index: {}]   ;;  %s2506_s4 = inlined_call_operand.vmem [shape: f32[1,32], index: 4, kind: input, shape index: {}]   ;;  %s2507_s5 = inlined_call_operand.vmem [shape: bf16[32,16], index: 5, kind: input, shape index: {}]   ;;  %s2508_s6 = inlined_call_operand.vmem [shape: f32[1,16], index: 6, kind: input, shape index: {}]   ;;  %s2509_s7 = inlined_call_operand.vmem [shape: f32[1,16], index: 7, kind: input, shape index: {}]   ;;  %s2510_s8 = inlined_call_operand.<no memory space> [shape: f32[1,1], index: 8, kind: input, shape index: {}]   ;;  %s2511_s9 = inlined_call_operand.vmem [shape: f32[512,1], index: 9, kind: output, shape index: {}]  }
   0x1   :  { %v14_v0 = vstv %s2510_s8 }
   0x2   :  { %15 = vst [vmem:[#allocation2] sm:$0x1] %v14_v0 }
   0x3 LB: > { %s1685_s12 = sadd.s32 4294967295, %s2047_s11   ;;  %p1689_p0 = scmp.ge.s32.totalorder %s2047_s11, 1  ;;  %s2047_s11 = sphi %s2102_s11, %s21_s11  }
   0x4   : > { %p290_p1 = scmp.lt.s32.totalorder %s2047_s11, 3 }
   0x6   : > { %p291_p2 = pnand %p1689_p0, %p290_p1 }
   0x7   : > { %s1690_s8 = sshll.u32 (!%p291_p2), %s1685_s12, 5 }
   0x8   : > { %294 = sbr.rel (%p291_p2) target bundleno = 861 (0x35d), region = 56  ;;  %p327_p3 = scmp.lt.s32.totalorder (!%p291_p2), %s1690_s8, 63 }
   0xd   : > { %v1953_v1 = vld [vmem:[%s2503_s1 + $0x8] sm:$0xff]   ;;  %v1954_v2 = vld [vmem:[%s2503_s1] sm:$0xff]   ;;  %s2513_s8 = smov (!%p327_p3, %s1690_s8), 63  ;;  %v1971_v3 = vld [vmem:[%s2505_s3 + $0x18] sm:$0xff]   ;;  %vm474_vm0 = vcmask 261120   ;;  %vm771_vm1 = vcmask 523264  }
   0xe   : > { %1829 = vmatprep.subr.bf16.mxu0 %v1953_v1  ;;  %1941 = vmatprep.subr.bf16.mxu1 %v1953_v1  ;;  %s1691_s19 = sshll.u32 %s2513_s8, 2  ;;  %v1972_v10 = vld [vmem:[%s2505_s3 + $0x10] sm:$0xff]   ;;  %v1973_v13 = vld [vmem:[%s2505_s3 + $0x8] sm:$0xff]   ;;  %v1974_v22 = vld [vmem:[%s2505_s3] sm:$0xff]   ;;  %vm1332_vm2 = vcmask 130048   ;;  %s1693_s21 = sshll.u32 %s2513_s8, 3 }
   0xf   : > { %1830 = vmatpush3.bf16.msra.mxu0 %v1953_v1  ;;  %1943 = vmatpush3.bf16.msra.mxu1 %v1953_v1  ;;  %s2125_s22 = scalar_lea.vmem %s2502_s0, %s1691_s19  ;;  %v1975_v23 = vld [vmem:[%s2507_s5 + $0x8] sm:$0xff]   ;;  %v1976_v24 = vld [vmem:[%s2507_s5] sm:$0xff]   ;;  %s2410_s24 = scalar_lea.vmem %s2511_s9, %s1693_s21  ;;  %vm1596_vm3 = vcmask 7168  }
  0x10   : > { %1831 = vmatprep.subr.bf16.mxu0 %v1954_v2  ;;  %1942 = vmatprep.subr.bf16.mxu1 %v1954_v2  ;;  %v1955_v4 = vld [vmem:[%s2125_s22] sm:$0xff]   ;;  %v1956_v5 = vld [vmem:[%s2125_s22 + $0x8] sm:$0xff]   ;;  %v1957_v6 = vld [vmem:[%s2125_s22 + $0x10] sm:$0xff]  }
  0x11   : > { %1833 = vmatprep.mubr.msk.bf16.mxu0 %vm474_vm0, %v1955_v4  ;;  %v1958_v7 = vld [vmem:[%s2125_s22 + $0x18] sm:$0xff]   ;;  %v1959_v8 = vld [vmem:[%s2125_s22 + $0x20] sm:$0xff]   ;;  %v1964_v11 = vld [vmem:[%s2125_s22 + $0x48] sm:$0xff]  }
  0x12   : > { %v1963_v9 = vld [vmem:[%s2125_s22 + $0x40] sm:$0xff]   ;;  %v1965_v12 = vld [vmem:[%s2125_s22 + $0x50] sm:$0xff]   ;;  %v1960_v14 = vld [vmem:[%s2125_s22 + $0x28] sm:$0xff]  }
  0x13   : > { %1832 = vmatpush3.bf16.msra.mxu0 %v1954_v2  ;;  %1944 = vmatpush3.bf16.msra.mxu1 %v1954_v2  ;;  %v1966_v15 = vld [vmem:[%s2125_s22 + $0x58] sm:$0xff]   ;;  %v1961_v16 = vld [vmem:[%s2125_s22 + $0x30] sm:$0xff]   ;;  %v1967_v17 = vld [vmem:[%s2125_s22 + $0x60] sm:$0xff]  }
  0x14   : > { %1865 = vmatprep.subr.bf16.mxu1 %v1971_v3  ;;  %1849 = vmatprep.mubr.msk.bf16.mxu1 %vm474_vm0, %v1963_v9  ;;  %v1962_v18 = vld [vmem:[%s2125_s22 + $0x38] sm:$0xff]   ;;  %v1968_v19 = vld [vmem:[%s2125_s22 + $0x68] sm:$0xff]   ;;  %v1969_v20 = vld [vmem:[%s2125_s22 + $0x70] sm:$0xff]  }
  0x15   : > { %v1970_v21 = vld [vmem:[%s2125_s22 + $0x78] sm:$0xff]   ;;  %1905 = vmatprep.subr.bf16.mxu0 %v1975_v23  ;;  %v2177_v27 = vld [vmem:[%s2504_s2] ss:$0 sm:$0xff] }
  0x16   : > { %1834 = vmatmul.mubr.msk.bf16.vlgmr.msra.gmra.mxu0 %vm474_vm0, %v1956_v5  ;;  %1850 = vmatmul.mubr.msk.bf16.vlgmr.msra.gmra.mxu1 %vm474_vm0, %v1964_v11 }
  0x17   : > { %1837 = vmatprep.mubr.msk.bf16.mxu0 %vm474_vm0, %v1957_v6  ;;  %1853 = vmatprep.mubr.msk.bf16.mxu1 %vm474_vm0, %v1965_v12 }
  0x18   : > { %1866 = vmatpush3.bf16.msra.mxu1 %v1971_v3  ;;  %1906 = vmatpush3.bf16.msra.mxu0 %v1975_v23 }
  0x19   : > { %1867 = vmatprep.subr.bf16.mxu1 %v1972_v10  ;;  %1907 = vmatprep.subr.bf16.mxu0 %v1976_v24 }
  0x1c   : > { %1868 = vmatpush3.bf16.msra.mxu1 %v1972_v10  ;;  %1908 = vmatpush3.bf16.msra.mxu0 %v1976_v24 }
  0x1d   : > { %1869 = vmatprep.subr.bf16.mxu1 %v1973_v13 }
  0x1e   : > { %1838 = vmatmul.mubr.msk.bf16.gmra.mxu0 %vm474_vm0, %v1958_v7  ;;  %1854 = vmatmul.mubr.msk.bf16.gmra.mxu1 %vm474_vm0, %v1966_v15 }
  0x1f   : > { %1841 = vmatprep.mubr.msk.bf16.mxu0 %vm474_vm0, %v1959_v8  ;;  %1857 = vmatprep.mubr.msk.bf16.mxu1 %vm474_vm0, %v1967_v17 }
  0x20   : > { %1870 = vmatpush3.bf16.msra.mxu1 %v1973_v13 }
  0x21   : > { %1871 = vmatprep.subr.bf16.mxu1 %v1974_v22 }
  0x24   : > { %1872 = vmatpush3.bf16.msra.mxu1 %v1974_v22 }
  0x26   : > { %1842 = vmatmul.mubr.msk.bf16.gmra.mxu0 %vm474_vm0, %v1960_v14  ;;  %1858 = vmatmul.mubr.msk.bf16.gmra.mxu1 %vm474_vm0, %v1968_v19 }
  0x27   : > { %1845 = vmatprep.mubr.msk.bf16.mxu0 %vm474_vm0, %v1961_v16  ;;  %1861 = vmatprep.mubr.msk.bf16.mxu1 %vm474_vm0, %v1969_v20 }
  0x2e   : > { %1846 = vmatmul.mubr.msk.bf16.gmra.mxu0 %vm474_vm0, %v1962_v18  ;;  %1862 = vmatmul.mubr.msk.bf16.gmra.mxu1 %vm474_vm0, %v1970_v21 }
  0xd6   : > { %v1835_v25 = vpop.f32.mrf.mxu0  ;;  %v2183_v36 = vpop.f32.mrf.mxu1 }
  0xd7   : > { %v566_v31 = vadd.f32 %v1835_v25, %v2177_v27 }
  0xd8   : > { %v557_v26 = vpop.f32.mrf.mxu0  ;;  %v621_v41 = vpop.f32.mrf.mxu1 }
  0xd9   : > { %v558_v29 = vadd.f32 %v2177_v27, %v557_v26  ;;  %v686_v39 = vmax.f32 %v566_v31, 0.0  ;;  %v622_v15 = vadd.f32 %v2177_v27, %v621_v41 }
  0xda   : > { %v1836_v28 = vpop.f32.mrf.mxu0  ;;  %v2185_v45 = vpop.f32.mrf.mxu1 }
  0xdb   : > { %v569_v30 = vadd.f32 %v1836_v28, %v2177_v27  ;;  %v684_v37 = vmax.f32 %v558_v29, 0.0  ;;  %v700_v24 = vmax.f32 %v622_v15, 0.0 }
  0xdc   : > { %v560_v32 = vpop.f32.mrf.mxu0  ;;  %v624_v50 = vpop.f32.mrf.mxu1 }
  0xdd   : > { %v561_v33 = vadd.f32 %v2177_v27, %v560_v32  ;;  %v687_v34 = vmax.f32 %v569_v30, 0.0  ;;  %v625_v16 = vadd.f32 %v2177_v27, %v624_v50 }
  0xde   : > { %v1839_v35 = vpop.f32.mrf.mxu0  ;;  %v2193_v54 = vpop.f32.mrf.mxu1 }
  0xdf   : > { %v685_v38 = vmax.f32 %v561_v33, 0.0  ;;  %v717_v43 = vpack.c.bf16 %v687_v34, %v686_v39  ;;  %v582_v48 = vadd.f32 %v1839_v35, %v2177_v27  ;;  %v701_v26 = vmax.f32 %v625_v16, 0.0 }
  0xe0   : > { %v573_v40 = vpop.f32.mrf.mxu0  ;;  %v637_v59 = vpop.f32.mrf.mxu1 }
  0xe1   : > { %v716_v42 = vpack.c.bf16 %v685_v38, %v684_v37  ;;  %v574_v46 = vadd.f32 %v2177_v27, %v573_v40  ;;  %v690_v57 = vmax.f32 %v582_v48, 0.0  ;;  %v724_v34 = vpack.c.bf16 %v701_v26, %v700_v24 }
  0xe2   : > { %v1840_v44 = vpop.f32.mrf.mxu0  ;;  %v1856_v63 = vpop.f32.mrf.mxu1  ;;  %v638_v35 = vadd.f32 %v2177_v27, %v637_v59  ;;  %v630_v38 = vadd.f32 %v2183_v36, %v2177_v27  ;;  %v633_v40 = vadd.f32 %v2185_v45, %v2177_v27  ;;  %v646_v45 = vadd.f32 %v2193_v54, %v2177_v27 }
  0xe3   : > { %v585_v47 = vadd.f32 %v1840_v44, %v2177_v27  ;;  %1873 = vmatprep.mubr.msk.bf16.mxu1 %vm771_vm1, %v716_v42  ;;  %v688_v55 = vmax.f32 %v574_v46, 0.0 }
  0xe4   : > { %v576_v49 = vpop.f32.mrf.mxu0  ;;  %1874 = vmatmul.mubr.msk.bf16.vlgmr.msra.gmra.mxu1 %vm771_vm1, %v717_v43  ;;  %v640_v4 = vpop.f32.mrf.mxu1  ;;  %v704_v42 = vmax.f32 %v638_v35, 0.0  ;;  %v702_v44 = vmax.f32 %v630_v38, 0.0  ;;  %v703_v46 = vmax.f32 %v633_v40, 0.0 }
  0xe5   : > { %v577_v51 = vadd.f32 %v2177_v27, %v576_v49  ;;  %v691_v52 = vmax.f32 %v585_v47, 0.0  ;;  %v641_v37 = vadd.f32 %v2177_v27, %v640_v4 }
  0xe6   : > { %v1843_v53 = vpop.f32.mrf.mxu0  ;;  %v1859_v8 = vpop.f32.mrf.mxu1  ;;  %v725_v50 = vpack.c.bf16 %v703_v46, %v702_v44 }
  0xe7   : > { %v689_v56 = vmax.f32 %v577_v51, 0.0  ;;  %v719_v61 = vpack.c.bf16 %v691_v52, %v690_v57  ;;  %v598_v2 = vadd.f32 %v1843_v53, %v2177_v27  ;;  %v705_v43 = vmax.f32 %v641_v37, 0.0 }
  0xe8   : > { %v589_v58 = vpop.f32.mrf.mxu0  ;;  %v653_v13 = vpop.f32.mrf.mxu1  ;;  %v649_v51 = vadd.f32 %v1856_v63, %v2177_v27  ;;  %v662_v54 = vadd.f32 %v1859_v8, %v2177_v27 }
  0xe9   : > { %v718_v60 = vpack.c.bf16 %v689_v56, %v688_v55  ;;  %v590_v0 = vadd.f32 %v2177_v27, %v589_v58  ;;  %v694_v11 = vmax.f32 %v598_v2, 0.0  ;;  %v726_v48 = vpack.c.bf16 %v705_v43, %v704_v42 }
  0xea   : > { %v1844_v62 = vpop.f32.mrf.mxu0  ;;  %v1860_v19 = vpop.f32.mrf.mxu1  ;;  %v654_v49 = vadd.f32 %v2177_v27, %v653_v13  ;;  %v706_v56 = vmax.f32 %v646_v45, 0.0  ;;  %v707_v57 = vmax.f32 %v649_v51, 0.0  ;;  %v710_v2 = vmax.f32 %v662_v54, 0.0  ;;  %v2239_v13 = vld [vmem:[%s2506_s4] ss:$0 sm:$0xff] }
  0xeb   : > { %v601_v1 = vadd.f32 %v1844_v62, %v2177_v27  ;;  %1877 = vmatprep.mubr.msk.bf16.mxu1 %vm771_vm1, %v718_v60  ;;  %v692_v9 = vmax.f32 %v590_v0, 0.0  ;;  %v665_v63 = vadd.f32 %v1860_v19, %v2177_v27 }
  0xec   : > { %v592_v3 = vpop.f32.mrf.mxu0  ;;  %1878 = vmatmul.mubr.msk.bf16.gmra.mxu1 %vm771_vm1, %v719_v61  ;;  %v656_v29 = vpop.f32.mrf.mxu1  ;;  %v708_v53 = vmax.f32 %v654_v49, 0.0  ;;  %v727_v62 = vpack.c.bf16 %v707_v57, %v706_v56 }
  0xed   : > { %v593_v5 = vadd.f32 %v2177_v27, %v592_v3  ;;  %v695_v6 = vmax.f32 %v601_v1, 0.0  ;;  %v657_v36 = vadd.f32 %v2177_v27, %v656_v29  ;;  %v711_v3 = vmax.f32 %v665_v63, 0.0 }
  0xee   : > { %v1847_v7 = vpop.f32.mrf.mxu0  ;;  %v1863_v41 = vpop.f32.mrf.mxu1 }
  0xef   : > { %v693_v10 = vmax.f32 %v593_v5, 0.0  ;;  %v721_v17 = vpack.c.bf16 %v695_v6, %v694_v11  ;;  %v614_v22 = vadd.f32 %v1847_v7, %v2177_v27  ;;  %v709_v55 = vmax.f32 %v657_v36, 0.0 }
  0xf0   : > { %v605_v12 = vpop.f32.mrf.mxu0  ;;  %v669_v47 = vpop.f32.mrf.mxu1  ;;  %v729_v5 = vpack.c.bf16 %v711_v3, %v710_v2  ;;  %v678_v6 = vadd.f32 %v1863_v41, %v2177_v27 }
  0xf1   : > { %v720_v14 = vpack.c.bf16 %v693_v10, %v692_v9  ;;  %v606_v20 = vadd.f32 %v2177_v27, %v605_v12  ;;  %v698_v32 = vmax.f32 %v614_v22, 0.0  ;;  %v728_v59 = vpack.c.bf16 %v709_v55, %v708_v53 }
  0xf2   : > { %v1848_v18 = vpop.f32.mrf.mxu0  ;;  %v1864_v52 = vpop.f32.mrf.mxu1  ;;  %v670_v60 = vadd.f32 %v2177_v27, %v669_v47  ;;  %v714_v8 = vmax.f32 %v678_v6, 0.0 }
  0xf3   : > { %v617_v21 = vadd.f32 %v1848_v18, %v2177_v27  ;;  %1881 = vmatprep.mubr.msk.bf16.mxu1 %vm771_vm1, %v720_v14  ;;  %v696_v30 = vmax.f32 %v606_v20, 0.0  ;;  %v681_v7 = vadd.f32 %v1864_v52, %v2177_v27 }
  0xf4   : > { %v608_v23 = vpop.f32.mrf.mxu0  ;;  %1882 = vmatmul.mubr.msk.bf16.gmra.mxu1 %vm771_vm1, %v721_v17  ;;  %v672_v58 = vpop.f32.mrf.mxu1  ;;  %v712_v0 = vmax.f32 %v670_v60, 0.0 }
  0xf5   : > { %v609_v25 = vadd.f32 %v2177_v27, %v608_v23  ;;  %v699_v28 = vmax.f32 %v617_v21, 0.0  ;;  %v673_v61 = vadd.f32 %v2177_v27, %v672_v58  ;;  %v715_v9 = vmax.f32 %v681_v7, 0.0 }
  0xf7   : > { %v697_v31 = vmax.f32 %v609_v25, 0.0  ;;  %v723_v39 = vpack.c.bf16 %v699_v28, %v698_v32  ;;  %v713_v1 = vmax.f32 %v673_v61, 0.0  ;;  %v731_v10 = vpack.c.bf16 %v715_v9, %v714_v8 }
  0xf9   : > { %v722_v33 = vpack.c.bf16 %v697_v31, %v696_v30  ;;  %v730_v4 = vpack.c.bf16 %v713_v1, %v712_v0 }
  0xfb   : > { %1885 = vmatprep.mubr.msk.bf16.mxu1 %vm771_vm1, %v722_v33 }
  0xfc   : > { %1886 = vmatmul.mubr.msk.bf16.gmra.mxu1 %vm771_vm1, %v723_v39 }
  0xfd   : > { %1889 = vmatprep.mubr.msk.bf16.mxu1 %vm771_vm1, %v724_v34 }
 0x104   : > { %1890 = vmatmul.mubr.msk.bf16.gmra.mxu1 %vm771_vm1, %v725_v50 }
 0x105   : > { %1893 = vmatprep.mubr.msk.bf16.mxu1 %vm771_vm1, %v726_v48 }
 0x10c   : > { %1894 = vmatmul.mubr.msk.bf16.gmra.mxu1 %vm771_vm1, %v727_v62 }
 0x10d   : > { %1897 = vmatprep.mubr.msk.bf16.mxu1 %vm771_vm1, %v728_v59 }
 0x114   : > { %1898 = vmatmul.mubr.msk.bf16.gmra.mxu1 %vm771_vm1, %v729_v5 }
 0x115   : > { %1901 = vmatprep.mubr.msk.bf16.mxu1 %vm771_vm1, %v730_v4 }
 0x11c   : > { %1902 = vmatmul.mubr.msk.bf16.gmra.mxu1 %vm771_vm1, %v731_v10 }
 0x1a4   : > { %v1875_v11 = vpop.f32.mrf.mxu1 }
 0x1a5   : > { %v863_v16 = vadd.f32 %v1875_v11, %v2239_v13 }
 0x1a6   : > { %v854_v12 = vpop.f32.mrf.mxu1 }
 0x1a7   : > { %v855_v15 = vadd.f32 %v2239_v13, %v854_v12  ;;  %v983_v23 = vmax.f32 %v863_v16, 0.0 }
 0x1a8   : > { %v1876_v14 = vpop.f32.mrf.mxu1 }
 0x1a9   : > { %v866_v27 = vadd.f32 %v1876_v14, %v2239_v13  ;;  %v981_v21 = vmax.f32 %v855_v15, 0.0 }
 0x1aa   : > { %v857_v17 = vpop.f32.mrf.mxu1 }
 0x1ab   : > { %v858_v18 = vadd.f32 %v2239_v13, %v857_v17  ;;  %v984_v19 = vmax.f32 %v866_v27, 0.0 }
 0x1ac   : > { %v1879_v20 = vpop.f32.mrf.mxu1 }
 0x1ad   : > { %v982_v22 = vmax.f32 %v858_v18, 0.0  ;;  %v1014_v26 = vpack.c.bf16 %v984_v19, %v983_v23  ;;  %v879_v31 = vadd.f32 %v1879_v20, %v2239_v13 }
 0x1ae   : > { %v870_v24 = vpop.f32.mrf.mxu1 }
 0x1af   : > { %v1013_v25 = vpack.c.bf16 %v982_v22, %v981_v21  ;;  %v871_v29 = vadd.f32 %v2239_v13, %v870_v24  ;;  %v987_v39 = vmax.f32 %v879_v31, 0.0 }
 0x1b0   : > { %v1880_v28 = vpop.f32.mrf.mxu1 }
 0x1b1   : > { %v882_v30 = vadd.f32 %v1880_v28, %v2239_v13  ;;  %1909 = vmatprep.mubr.msk.bf16.mxu0 %vm474_vm0, %v1013_v25  ;;  %v985_v37 = vmax.f32 %v871_v29, 0.0 }
 0x1b2   : > { %v873_v32 = vpop.f32.mrf.mxu1  ;;  %1910 = vmatmul.mubr.msk.bf16.vlgmr.msra.gmra.mxu0 %vm474_vm0, %v1014_v26 }
 0x1b3   : > { %v874_v33 = vadd.f32 %v2239_v13, %v873_v32  ;;  %v988_v34 = vmax.f32 %v882_v30, 0.0 }
 0x1b4   : > { %v1883_v35 = vpop.f32.mrf.mxu1 }
 0x1b5   : > { %v986_v38 = vmax.f32 %v874_v33, 0.0  ;;  %v1016_v42 = vpack.c.bf16 %v988_v34, %v987_v39  ;;  %v895_v47 = vadd.f32 %v1883_v35, %v2239_v13 }
 0x1b6   : > { %v886_v40 = vpop.f32.mrf.mxu1 }
 0x1b7   : > { %v1015_v41 = vpack.c.bf16 %v986_v38, %v985_v37  ;;  %v887_v44 = vadd.f32 %v2239_v13, %v886_v40  ;;  %v991_v52 = vmax.f32 %v895_v47, 0.0 }
 0x1b8   : > { %v1884_v43 = vpop.f32.mrf.mxu1 }
 0x1b9   : > { %v898_v46 = vadd.f32 %v1884_v43, %v2239_v13  ;;  %1913 = vmatprep.mubr.msk.bf16.mxu0 %vm474_vm0, %v1015_v41  ;;  %v989_v45 = vmax.f32 %v887_v44, 0.0 }
 0x1ba   : > { %v889_v48 = vpop.f32.mrf.mxu1  ;;  %1914 = vmatmul.mubr.msk.bf16.gmra.mxu0 %vm474_vm0, %v1016_v42 }
 0x1bb   : > { %v890_v49 = vadd.f32 %v2239_v13, %v889_v48  ;;  %v992_v36 = vmax.f32 %v898_v46, 0.0 }
 0x1bc   : > { %v1887_v50 = vpop.f32.mrf.mxu1 }
 0x1bd   : > { %v990_v51 = vmax.f32 %v890_v49, 0.0  ;;  %v1018_v56 = vpack.c.bf16 %v992_v36, %v991_v52  ;;  %v911_v60 = vadd.f32 %v1887_v50, %v2239_v13 }
 0x1be   : > { %v902_v53 = vpop.f32.mrf.mxu1 }
 0x1bf   : > { %v1017_v55 = vpack.c.bf16 %v990_v51, %v989_v45  ;;  %v903_v58 = vadd.f32 %v2239_v13, %v902_v53  ;;  %v995_v2 = vmax.f32 %v911_v60, 0.0 }
 0x1c0   : > { %v1888_v57 = vpop.f32.mrf.mxu1 }
 0x1c1   : > { %v914_v59 = vadd.f32 %v1888_v57, %v2239_v13  ;;  %1917 = vmatprep.mubr.msk.bf16.mxu0 %vm474_vm0, %v1017_v55  ;;  %v993_v0 = vmax.f32 %v903_v58, 0.0 }
 0x1c2   : > { %v905_v61 = vpop.f32.mrf.mxu1  ;;  %1918 = vmatmul.mubr.msk.bf16.gmra.mxu0 %vm474_vm0, %v1018_v56 }
 0x1c3   : > { %v906_v62 = vadd.f32 %v2239_v13, %v905_v61  ;;  %v996_v54 = vmax.f32 %v914_v59, 0.0 }
 0x1c4   : > { %v1891_v63 = vpop.f32.mrf.mxu1 }
 0x1c5   : > { %v994_v1 = vmax.f32 %v906_v62, 0.0  ;;  %v1020_v5 = vpack.c.bf16 %v996_v54, %v995_v2  ;;  %v927_v9 = vadd.f32 %v1891_v63, %v2239_v13  ;;  %v2292_v62 = vld [vmem:[%s2508_s6] ss:$0 sm:$0xff] }
 0x1c6   : > { %v918_v3 = vpop.f32.mrf.mxu1 }
 0x1c7   : > { %v1019_v4 = vpack.c.bf16 %v994_v1, %v993_v0  ;;  %v919_v7 = vadd.f32 %v2239_v13, %v918_v3  ;;  %v999_v16 = vmax.f32 %v927_v9, 0.0 }
 0x1c8   : > { %v1892_v6 = vpop.f32.mrf.mxu1 }
 0x1c9   : > { %v930_v8 = vadd.f32 %v1892_v6, %v2239_v13  ;;  %1921 = vmatprep.mubr.msk.bf16.mxu0 %vm474_vm0, %v1019_v4  ;;  %v997_v15 = vmax.f32 %v919_v7, 0.0 }
 0x1ca   : > { %v921_v10 = vpop.f32.mrf.mxu1  ;;  %1922 = vmatmul.mubr.msk.bf16.gmra.mxu0 %vm474_vm0, %v1020_v5 }
 0x1cb   : > { %v922_v11 = vadd.f32 %v2239_v13, %v921_v10  ;;  %v1000_v12 = vmax.f32 %v930_v8, 0.0 }
 0x1cc   : > { %v1895_v14 = vpop.f32.mrf.mxu1 }
 0x1cd   : > { %v998_v27 = vmax.f32 %v922_v11, 0.0  ;;  %v1022_v19 = vpack.c.bf16 %v1000_v12, %v999_v16  ;;  %v943_v23 = vadd.f32 %v1895_v14, %v2239_v13 }
 0x1ce   : > { %v934_v17 = vpop.f32.mrf.mxu1 }
 0x1cf   : > { %v1021_v18 = vpack.c.bf16 %v998_v27, %v997_v15  ;;  %v935_v21 = vadd.f32 %v2239_v13, %v934_v17  ;;  %v1003_v31 = vmax.f32 %v943_v23, 0.0 }
 0x1d0   : > { %v1896_v20 = vpop.f32.mrf.mxu1 }
 0x1d1   : > { %v946_v22 = vadd.f32 %v1896_v20, %v2239_v13  ;;  %1925 = vmatprep.mubr.msk.bf16.mxu0 %vm474_vm0, %v1021_v18  ;;  %v1001_v29 = vmax.f32 %v935_v21, 0.0 }
 0x1d2   : > { %v937_v24 = vpop.f32.mrf.mxu1  ;;  %1926 = vmatmul.mubr.msk.bf16.gmra.mxu0 %vm474_vm0, %v1022_v19 }
 0x1d3   : > { %v938_v25 = vadd.f32 %v2239_v13, %v937_v24  ;;  %v1004_v26 = vmax.f32 %v946_v22, 0.0 }
 0x1d4   : > { %v1899_v28 = vpop.f32.mrf.mxu1 }
 0x1d5   : > { %v1002_v30 = vmax.f32 %v938_v25, 0.0  ;;  %v1024_v34 = vpack.c.bf16 %v1004_v26, %v1003_v31  ;;  %v959_v39 = vadd.f32 %v1899_v28, %v2239_v13 }
 0x1d6   : > { %v950_v32 = vpop.f32.mrf.mxu1 }
 0x1d7   : > { %v1023_v33 = vpack.c.bf16 %v1002_v30, %v1001_v29  ;;  %v951_v37 = vadd.f32 %v2239_v13, %v950_v32  ;;  %v1007_v47 = vmax.f32 %v959_v39, 0.0 }
 0x1d8   : > { %v1900_v35 = vpop.f32.mrf.mxu1 }
 0x1d9   : > { %v962_v38 = vadd.f32 %v1900_v35, %v2239_v13  ;;  %1929 = vmatprep.mubr.msk.bf16.mxu0 %vm474_vm0, %v1023_v33  ;;  %v1005_v44 = vmax.f32 %v951_v37, 0.0 }
 0x1da   : > { %v953_v40 = vpop.f32.mrf.mxu1  ;;  %1930 = vmatmul.mubr.msk.bf16.gmra.mxu0 %vm474_vm0, %v1024_v34 }
 0x1db   : > { %v954_v41 = vadd.f32 %v2239_v13, %v953_v40  ;;  %v1008_v42 = vmax.f32 %v962_v38, 0.0 }
 0x1dc   : > { %v1903_v43 = vpop.f32.mrf.mxu1 }
 0x1dd   : > { %v1006_v46 = vmax.f32 %v954_v41, 0.0  ;;  %v1026_v36 = vpack.c.bf16 %v1008_v42, %v1007_v47  ;;  %v975_v52 = vadd.f32 %v1903_v43, %v2239_v13 }
 0x1de   : > { %v966_v48 = vpop.f32.mrf.mxu1 }
 0x1df   : > { %v1025_v49 = vpack.c.bf16 %v1006_v46, %v1005_v44  ;;  %v967_v45 = vadd.f32 %v2239_v13, %v966_v48  ;;  %v1011_v59 = vmax.f32 %v975_v52, 0.0 }
 0x1e0   : > { %v1904_v50 = vpop.f32.mrf.mxu1 }
 0x1e1   : > { %v978_v51 = vadd.f32 %v1904_v50, %v2239_v13  ;;  %1933 = vmatprep.mubr.msk.bf16.mxu0 %vm474_vm0, %v1025_v49  ;;  %v1009_v57 = vmax.f32 %v967_v45, 0.0 }
 0x1e2   : > { %v969_v53 = vpop.f32.mrf.mxu1  ;;  %1934 = vmatmul.mubr.msk.bf16.gmra.mxu0 %vm474_vm0, %v1026_v36 }
 0x1e3   : > { %v970_v55 = vadd.f32 %v2239_v13, %v969_v53  ;;  %v1012_v56 = vmax.f32 %v978_v51, 0.0  ;;  %v2298_v13 = vld [vmem:[%s2509_s7] ss:$0 sm:$0xff] }
 0x1e5   : > { %v1010_v58 = vmax.f32 %v970_v55, 0.0  ;;  %v1028_v61 = vpack.c.bf16 %v1012_v56, %v1011_v59 }
 0x1e7   : > { %v1027_v60 = vpack.c.bf16 %v1010_v58, %v1009_v57 }
 0x1e9   : > { %1937 = vmatprep.mubr.msk.bf16.mxu0 %vm474_vm0, %v1027_v60 }
 0x1ea   : > { %1938 = vmatmul.mubr.msk.bf16.gmra.mxu0 %vm474_vm0, %v1028_v61 }
 0x272   : > { %v1911_v54 = vpop.f32.mrf.mxu0 }
 0x273   : > { %v1143_v63 = vadd.f32 %v1911_v54, %v2292_v62 }
 0x274   : > { %v1134_v0 = vpop.f32.mrf.mxu0 }
 0x275   : > { %v1263_v1 = vmax.f32 %v1143_v63, 0.0  ;;  %v1135_v2 = vadd.f32 %v2292_v62, %v1134_v0 }
 0x276   : > { %v1912_v3 = vpop.f32.mrf.mxu0 }
 0x277   : > { %v1261_v4 = vmax.f32 %v1135_v2, 0.0  ;;  %v1146_v5 = vadd.f32 %v1912_v3, %v2292_v62  ;;  %v1302_v6 = vmul.f32 %v2298_v13, %v1263_v1 }
 0x278   : > { %v1137_v7 = vpop.f32.mrf.mxu0 }
 0x279   : > { %v1264_v8 = vmax.f32 %v1146_v5, 0.0  ;;  %v1138_v9 = vadd.f32 %v2292_v62, %v1137_v7  ;;  %v1339_v10 = vsel %vm1332_vm2, %v1302_v6, 0.0  ;;  %v1300_v11 = vmul.f32 %v2298_v13, %v1261_v4 }
 0x27a   : > { %1340 = vadd.xlane.f32.xlu1 %v1339_v10  ;;  %v1915_v12 = vpop.f32.mrf.mxu0 }
 0x27b   : > { %v1262_v14 = vmax.f32 %v1138_v9, 0.0  ;;  %v1159_v15 = vadd.f32 %v1915_v12, %v2292_v62  ;;  %v1333_v27 = vsel %vm1332_vm2, %v1300_v11, 0.0  ;;  %v1303_v16 = vmul.f32 %v2298_v13, %v1264_v8 }
 0x27c   : > { %v1150_v17 = vpop.f32.mrf.mxu0  ;;  %1334 = vadd.xlane.f32.xlu0 %v1333_v27 }
 0x27d   : > { %v1267_v18 = vmax.f32 %v1159_v15, 0.0  ;;  %v1151_v19 = vadd.f32 %v2292_v62, %v1150_v17  ;;  %v1342_v20 = vsel %vm1332_vm2, %v1303_v16, 0.0  ;;  %v1301_v21 = vmul.f32 %v2298_v13, %v1262_v14 }
 0x27e   : > { %1343 = vadd.xlane.f32.xlu1 %v1342_v20  ;;  %v1916_v22 = vpop.f32.mrf.mxu0 }
 0x27f   : > { %v1265_v23 = vmax.f32 %v1151_v19, 0.0  ;;  %v1162_v24 = vadd.f32 %v1916_v22, %v2292_v62  ;;  %v1336_v25 = vsel %vm1332_vm2, %v1301_v21, 0.0  ;;  %v1306_v26 = vmul.f32 %v2298_v13, %v1267_v18 }
 0x280   : > { %v1153_v28 = vpop.f32.mrf.mxu0  ;;  %1337 = vadd.xlane.f32.xlu0 %v1336_v25 }
 0x281   : > { %v1268_v29 = vmax.f32 %v1162_v24, 0.0  ;;  %v1154_v30 = vadd.f32 %v2292_v62, %v1153_v28  ;;  %v1351_v32 = vsel %vm1332_vm2, %v1306_v26, 0.0  ;;  %v1304_v37 = vmul.f32 %v2298_v13, %v1265_v23 }
 0x282   : > { %v1919_v31 = vpop.f32.mrf.mxu0 }
 0x283   : > { %v1266_v33 = vmax.f32 %v1154_v30, 0.0  ;;  %v1175_v34 = vadd.f32 %v1919_v31, %v2292_v62  ;;  %v1307_v35 = vmul.f32 %v2298_v13, %v1268_v29  ;;  %v1345_v47 = vsel %vm1332_vm2, %v1304_v37, 0.0 }
 0x284   : > { %v1166_v38 = vpop.f32.mrf.mxu0  ;;  %1352 = vadd.xlane.f32.xlu0 %v1351_v32 }
 0x285   : > { %v1271_v39 = vmax.f32 %v1175_v34, 0.0  ;;  %v1167_v40 = vadd.f32 %v2292_v62, %v1166_v38  ;;  %v1354_v41 = vsel %vm1332_vm2, %v1307_v35, 0.0  ;;  %v1305_v42 = vmul.f32 %v2298_v13, %v1266_v33 }
 0x286   : > { %1355 = vadd.xlane.f32.xlu1 %v1354_v41  ;;  %v1920_v43 = vpop.f32.mrf.mxu0 }
 0x287   : > { %v1269_v44 = vmax.f32 %v1167_v40, 0.0  ;;  %v1178_v46 = vadd.f32 %v1920_v43, %v2292_v62  ;;  %v1310_v48 = vmul.f32 %v2298_v13, %v1271_v39  ;;  %v1348_v45 = vsel %vm1332_vm2, %v1305_v42, 0.0 }
 0x288   : > { %v1169_v49 = vpop.f32.mrf.mxu0  ;;  %1346 = vadd.xlane.f32.xlu0 %v1345_v47 }
 0x289   : > { %v1272_v36 = vmax.f32 %v1178_v46, 0.0  ;;  %v1170_v50 = vadd.f32 %v2292_v62, %v1169_v49  ;;  %v1363_v52 = vsel %vm1332_vm2, %v1310_v48, 0.0  ;;  %v1308_v57 = vmul.f32 %v2298_v13, %v1269_v44 }
 0x28a   : > { %v1923_v51 = vpop.f32.mrf.mxu0  ;;  %1349 = vadd.xlane.f32.xlu1 %v1348_v45 }
 0x28b   : > { %v1270_v53 = vmax.f32 %v1170_v50, 0.0  ;;  %v1191_v55 = vadd.f32 %v1923_v51, %v2292_v62  ;;  %v1311_v56 = vmul.f32 %v2298_v13, %v1272_v36  ;;  %v1357_v2 = vsel %vm1332_vm2, %v1308_v57, 0.0 }
 0x28c   : > { %v1182_v58 = vpop.f32.mrf.mxu0  ;;  %1364 = vadd.xlane.f32.xlu0 %v1363_v52 }
 0x28d   : > { %v1275_v59 = vmax.f32 %v1191_v55, 0.0  ;;  %v1183_v60 = vadd.f32 %v2292_v62, %v1182_v58  ;;  %v1366_v61 = vsel %vm1332_vm2, %v1311_v56, 0.0  ;;  %v1309_v54 = vmul.f32 %v2298_v13, %v1270_v53 }
 0x28e   : > { %v1924_v63 = vpop.f32.mrf.mxu0  ;;  %1367 = vadd.xlane.f32.xlu1 %v1366_v61 }
 0x28f   : > { %v1273_v0 = vmax.f32 %v1183_v60, 0.0  ;;  %v1194_v1 = vadd.f32 %v1924_v63, %v2292_v62  ;;  %v1314_v3 = vmul.f32 %v2298_v13, %v1275_v59  ;;  %v1360_v7 = vsel %vm1332_vm2, %v1309_v54, 0.0 }
 0x290   : > { %v1185_v4 = vpop.f32.mrf.mxu0  ;;  %1358 = vadd.xlane.f32.xlu0 %v1357_v2 }
 0x291   : > { %v1276_v5 = vmax.f32 %v1194_v1, 0.0  ;;  %v1186_v6 = vadd.f32 %v2292_v62, %v1185_v4  ;;  %v1375_v9 = vsel %vm1332_vm2, %v1314_v3, 0.0  ;;  %v1312_v14 = vmul.f32 %v2298_v13, %v1273_v0 }
 0x292   : > { %v1927_v8 = vpop.f32.mrf.mxu0  ;;  %1361 = vadd.xlane.f32.xlu1 %v1360_v7 }
 0x293   : > { %v1274_v10 = vmax.f32 %v1186_v6, 0.0  ;;  %v1207_v11 = vadd.f32 %v1927_v8, %v2292_v62  ;;  %v1315_v12 = vmul.f32 %v2298_v13, %v1276_v5  ;;  %v1369_v22 = vsel %vm1332_vm2, %v1312_v14, 0.0 }
 0x294   : > { %v1198_v15 = vpop.f32.mrf.mxu0  ;;  %1376 = vadd.xlane.f32.xlu0 %v1375_v9 }
 0x295   : > { %v1279_v27 = vmax.f32 %v1207_v11, 0.0  ;;  %v1199_v16 = vadd.f32 %v2292_v62, %v1198_v15  ;;  %v1378_v17 = vsel %vm1332_vm2, %v1315_v12, 0.0  ;;  %v1313_v18 = vmul.f32 %v2298_v13, %v1274_v10 }
 0x296   : > { %v1928_v19 = vpop.f32.mrf.mxu0  ;;  %1379 = vadd.xlane.f32.xlu1 %v1378_v17 }
 0x297   : > { %v1277_v20 = vmax.f32 %v1199_v16, 0.0  ;;  %v1210_v21 = vadd.f32 %v1928_v19, %v2292_v62  ;;  %v1318_v23 = vmul.f32 %v2298_v13, %v1279_v27  ;;  %v1372_v28 = vsel %vm1332_vm2, %v1313_v18, 0.0 }
 0x298   : > { %v1201_v24 = vpop.f32.mrf.mxu0  ;;  %1370 = vadd.xlane.f32.xlu0 %v1369_v22 }
 0x299   : > { %v1280_v25 = vmax.f32 %v1210_v21, 0.0  ;;  %v1202_v26 = vadd.f32 %v2292_v62, %v1201_v24  ;;  %v1387_v30 = vsel %vm1332_vm2, %v1318_v23, 0.0  ;;  %v1316_v34 = vmul.f32 %v2298_v13, %v1277_v20 }
 0x29a   : > { %v1931_v29 = vpop.f32.mrf.mxu0  ;;  %1373 = vadd.xlane.f32.xlu1 %v1372_v28 }
 0x29b   : > { %v1278_v31 = vmax.f32 %v1202_v26, 0.0  ;;  %v1223_v32 = vadd.f32 %v1931_v29, %v2292_v62  ;;  %v1319_v33 = vmul.f32 %v2298_v13, %v1280_v25  ;;  %v1381_v44 = vsel %vm1332_vm2, %v1316_v34, 0.0  ;;  %v2395_v34 = vld [vmem:[#allocation2] ss:$0 sm:$0xff] }
 0x29c   : > { %v1214_v35 = vpop.f32.mrf.mxu0  ;;  %1388 = vadd.xlane.f32.xlu0 %v1387_v30 }
 0x29d   : > { %v1283_v37 = vmax.f32 %v1223_v32, 0.0  ;;  %v1215_v38 = vadd.f32 %v2292_v62, %v1214_v35  ;;  %v1390_v39 = vsel %vm1332_vm2, %v1319_v33, 0.0  ;;  %v1317_v40 = vmul.f32 %v2298_v13, %v1278_v31 }
 0x29e   : > { %v1932_v41 = vpop.f32.mrf.mxu0  ;;  %1391 = vadd.xlane.f32.xlu1 %v1390_v39 }
 0x29f   : > { %v1281_v42 = vmax.f32 %v1215_v38, 0.0  ;;  %v1226_v43 = vadd.f32 %v1932_v41, %v2292_v62  ;;  %v1322_v46 = vmul.f32 %v2298_v13, %v1283_v37  ;;  %v1384_v36 = vsel %vm1332_vm2, %v1317_v40, 0.0 }
 0x2a0   : > { %v1217_v47 = vpop.f32.mrf.mxu0  ;;  %1382 = vadd.xlane.f32.xlu0 %v1381_v44 }
 0x2a1   : > { %v1284_v48 = vmax.f32 %v1226_v43, 0.0  ;;  %v1218_v49 = vadd.f32 %v2292_v62, %v1217_v47  ;;  %v1399_v45 = vsel %vm1332_vm2, %v1322_v46, 0.0  ;;  %v1320_v55 = vmul.f32 %v2298_v13, %v1281_v42 }
 0x2a2   : > { %v1935_v50 = vpop.f32.mrf.mxu0  ;;  %1385 = vadd.xlane.f32.xlu1 %v1384_v36 }
 0x2a3   : > { %v1282_v51 = vmax.f32 %v1218_v49, 0.0  ;;  %v1239_v52 = vadd.f32 %v1935_v50, %v2292_v62  ;;  %v1323_v53 = vmul.f32 %v2298_v13, %v1284_v48  ;;  %v1393_v0 = vsel %vm1332_vm2, %v1320_v55, 0.0 }
 0x2a4   : > { %v1230_v56 = vpop.f32.mrf.mxu0  ;;  %1400 = vadd.xlane.f32.xlu0 %v1399_v45 }
 0x2a5   : > { %v1287_v57 = vmax.f32 %v1239_v52, 0.0  ;;  %v1231_v58 = vadd.f32 %v2292_v62, %v1230_v56  ;;  %v1402_v59 = vsel %vm1332_vm2, %v1323_v53, 0.0  ;;  %v1321_v60 = vmul.f32 %v2298_v13, %v1282_v51 }
 0x2a6   : > { %v1936_v61 = vpop.f32.mrf.mxu0  ;;  %1403 = vadd.xlane.f32.xlu1 %v1402_v59 }
 0x2a7   : > { %v1285_v54 = vmax.f32 %v1231_v58, 0.0  ;;  %v1242_v63 = vadd.f32 %v1936_v61, %v2292_v62  ;;  %v1326_v1 = vmul.f32 %v2298_v13, %v1287_v57  ;;  %v1396_v5 = vsel %vm1332_vm2, %v1321_v60, 0.0 }
 0x2a8   : > { %v1233_v2 = vpop.f32.mrf.mxu0  ;;  %1394 = vadd.xlane.f32.xlu0 %v1393_v0 }
 0x2a9   : > { %v1288_v3 = vmax.f32 %v1242_v63, 0.0  ;;  %v1234_v4 = vadd.f32 %v2292_v62, %v1233_v2  ;;  %v1411_v7 = vsel %vm1332_vm2, %v1326_v1, 0.0  ;;  %v1324_v11 = vmul.f32 %v2298_v13, %v1285_v54 }
 0x2aa   : > { %v1939_v6 = vpop.f32.mrf.mxu0  ;;  %1397 = vadd.xlane.f32.xlu1 %v1396_v5 }
 0x2ab   : > { %v1286_v8 = vmax.f32 %v1234_v4, 0.0  ;;  %v1255_v9 = vadd.f32 %v1939_v6, %v2292_v62  ;;  %v1327_v10 = vmul.f32 %v2298_v13, %v1288_v3  ;;  %v1405_v20 = vsel %vm1332_vm2, %v1324_v11, 0.0 }
 0x2ac   : > { %v1246_v12 = vpop.f32.mrf.mxu0  ;;  %1412 = vadd.xlane.f32.xlu0 %v1411_v7 }
 0x2ad   : > { %v1247_v14 = vadd.f32 %v2292_v62, %v1246_v12  ;;  %v1414_v15 = vsel %vm1332_vm2, %v1327_v10, 0.0  ;;  %v1325_v27 = vmul.f32 %v2298_v13, %v1286_v8  ;;  %v1291_v17 = vmax.f32 %v1255_v9, 0.0 }
 0x2ae   : > { %v1940_v16 = vpop.f32.mrf.mxu0  ;;  %1415 = vadd.xlane.f32.xlu1 %v1414_v15 }
 0x2af   : > { %v1289_v18 = vmax.f32 %v1247_v14, 0.0  ;;  %v1258_v19 = vadd.f32 %v1940_v16, %v2292_v62  ;;  %v1408_v24 = vsel %vm1332_vm2, %v1325_v27, 0.0  ;;  %v1330_v29 = vmul.f32 %v2298_v13, %v1291_v17 }
 0x2b0   : > { %v1249_v21 = vpop.f32.mrf.mxu0  ;;  %1406 = vadd.xlane.f32.xlu0 %v1405_v20 }
 0x2b1   : > { %v1292_v22 = vmax.f32 %v1258_v19, 0.0  ;;  %v1250_v23 = vadd.f32 %v2292_v62, %v1249_v21  ;;  %v1328_v25 = vmul.f32 %v2298_v13, %v1289_v18  ;;  %v1423_v62 = vsel %vm1332_vm2, %v1330_v29, 0.0 }
 0x2b2   : > { %1409 = vadd.xlane.f32.xlu1 %v1408_v24 }
 0x2b3   : > { %v1290_v26 = vmax.f32 %v1250_v23, 0.0  ;;  %v1417_v28 = vsel %vm1332_vm2, %v1328_v25, 0.0  ;;  %v1331_v30 = vmul.f32 %v2298_v13, %v1292_v22 }
 0x2b4   : > { %1418 = vadd.xlane.f32.xlu0 %v1417_v28 }
 0x2b5   : > { %v1329_v31 = vmul.f32 %v2298_v13, %v1290_v26  ;;  %v1426_v32 = vsel %vm1332_vm2, %v1331_v30, 0.0 }
 0x2b7   : > { %v1420_v33 = vsel %vm1332_vm2, %v1329_v31, 0.0 }
 0x2b8   : > { %1421 = vadd.xlane.f32.xlu1 %v1420_v33  ;;  %1424 = vadd.xlane.f32.xlu0 %v1423_v62 }
 0x2bc   : > { %1427 = vadd.xlane.f32.xlu1 %v1426_v32 }
 0x303   : > { %v1341_v35 = vpop.xlane.xlu1 %1340 }
 0x304   : > { %v1438_v37 = vadd.f32 %v2395_v34, %v1341_v35 }
 0x305   : > { %v1335_v38 = vpop.xlane.xlu0 %1334 }
 0x306   : > { %v1470_v39 = vmul.f32 0.5, %v1438_v37  ;;  %v1436_v40 = vadd.f32 %v2395_v34, %v1335_v38 }
 0x307   : > { %v1344_v41 = vpop.xlane.xlu1 %1343 }
 0x308   : > { %1977 = vtanh.f32 %v1470_v39  ;;  %v1468_v13 = vmul.f32 0.5, %v1436_v40  ;;  %v1439_v42 = vadd.f32 %v2395_v34, %v1344_v41 }
 0x309   : > { %v1338_v43 = vpop.xlane.xlu0 %1337 }
 0x30a   : > { %1979 = vtanh.f32 %v1468_v13  ;;  %v1471_v44 = vmul.f32 0.5, %v1439_v42  ;;  %v1437_v46 = vadd.f32 %v2395_v34, %v1338_v43 }
 0x30c   : > { %1981 = vtanh.f32 %v1471_v44  ;;  %v1469_v47 = vmul.f32 0.5, %v1437_v46 }
 0x30d   : > { %v1353_v48 = vpop.xlane.xlu0 %1352 }
 0x30e   : > { %1983 = vtanh.f32 %v1469_v47  ;;  %v1442_v49 = vadd.f32 %v2395_v34, %v1353_v48 }
 0x30f   : > { %v1356_v36 = vpop.xlane.xlu1 %1355 }
 0x310   : > { %v1474_v50 = vmul.f32 0.5, %v1442_v49  ;;  %v1443_v45 = vadd.f32 %v2395_v34, %v1356_v36 }
 0x311   : > { %v1347_v51 = vpop.xlane.xlu0 %1346 }
 0x312   : > { %1985 = vtanh.f32 %v1474_v50  ;;  %v1475_v52 = vmul.f32 0.5, %v1443_v45  ;;  %v1440_v53 = vadd.f32 %v2395_v34, %v1347_v51 }
 0x313   : > { %v1350_v55 = vpop.xlane.xlu1 %1349 }
 0x314   : > { %1987 = vtanh.f32 %v1475_v52  ;;  %v1472_v56 = vmul.f32 0.5, %v1440_v53  ;;  %v1441_v57 = vadd.f32 %v2395_v34, %v1350_v55 }
 0x315   : > { %v1978_v58 = vpop.eup %1977  ;;  %v1365_v59 = vpop.xlane.xlu0 %1364 }
 0x316   : > { %v1534_v60 = vadd.f32 1.0, %v1978_v58  ;;  %1989 = vtanh.f32 %v1472_v56  ;;  %v1473_v61 = vmul.f32 0.5, %v1441_v57  ;;  %v1446_v54 = vadd.f32 %v2395_v34, %v1365_v59 }
 0x317   : > { %v1980_v63 = vpop.eup %1979  ;;  %v1368_v0 = vpop.xlane.xlu1 %1367 }
 0x318   : > { %v1566_v1 = vmul.f32 0.5, %v1534_v60  ;;  %v1532_v2 = vadd.f32 1.0, %v1980_v63  ;;  %1991 = vtanh.f32 %v1473_v61  ;;  %v1478_v3 = vmul.f32 0.5, %v1446_v54 }
 0x319   : > { %v1982_v4 = vpop.eup %1981  ;;  %v1447_v5 = vadd.f32 %v2395_v34, %v1368_v0  ;;  %v1359_v6 = vpop.xlane.xlu0 %1358 }
 0x31a   : > { %1599 = vst.msk [vmem:[%s2410_s24 + $0x10] sm:$0xff] %vm1596_vm3, %v1566_v1  ;;  %v1564_v7 = vmul.f32 0.5, %v1532_v2  ;;  %v1535_v8 = vadd.f32 1.0, %v1982_v4  ;;  %1993 = vtanh.f32 %v1478_v3  ;;  %v1444_v9 = vadd.f32 %v2395_v34, %v1359_v6 }
 0x31b   : > { %v1984_v10 = vpop.eup %1983  ;;  %v1479_v11 = vmul.f32 0.5, %v1447_v5  ;;  %v1362_v12 = vpop.xlane.xlu1 %1361 }
 0x31c   : > { %1597 = vst.msk [vmem:[%s2410_s24] sm:$0xff] %vm1596_vm3, %v1564_v7  ;;  %v1567_v14 = vmul.f32 0.5, %v1535_v8  ;;  %v1533_v15 = vadd.f32 1.0, %v1984_v10  ;;  %v1476_v27 = vmul.f32 0.5, %v1444_v9  ;;  %v1445_v16 = vadd.f32 %v2395_v34, %v1362_v12 }
 0x31d   : > { %1995 = vtanh.f32 %v1479_v11  ;;  %v1377_v17 = vpop.xlane.xlu0 %1376 }
 0x31e   : > { %1600 = vst.msk [vmem:[%s2410_s24 + $0x18] sm:$0xff] %vm1596_vm3, %v1567_v14  ;;  %v1565_v18 = vmul.f32 0.5, %v1533_v15  ;;  %1997 = vtanh.f32 %v1476_v27  ;;  %v1477_v19 = vmul.f32 0.5, %v1445_v16  ;;  %v1450_v20 = vadd.f32 %v2395_v34, %v1377_v17 }
 0x31f   : > { %v1986_v21 = vpop.eup %1985  ;;  %v1380_v22 = vpop.xlane.xlu1 %1379 }
 0x320   : > { %1598 = vst.msk [vmem:[%s2410_s24 + $0x8] sm:$0xff] %vm1596_vm3, %v1565_v18  ;;  %v1538_v23 = vadd.f32 1.0, %v1986_v21  ;;  %1999 = vtanh.f32 %v1477_v19  ;;  %v1482_v24 = vmul.f32 0.5, %v1450_v20  ;;  %v1451_v25 = vadd.f32 %v2395_v34, %v1380_v22 }
 0x321   : > { %v1988_v26 = vpop.eup %1987  ;;  %v1371_v28 = vpop.xlane.xlu0 %1370 }
 0x322   : > { %v1570_v29 = vmul.f32 0.5, %v1538_v23  ;;  %v1539_v30 = vadd.f32 1.0, %v1988_v26  ;;  %2001 = vtanh.f32 %v1482_v24  ;;  %v1483_v31 = vmul.f32 0.5, %v1451_v25 }
 0x323   : > { %v1990_v32 = vpop.eup %1989  ;;  %v1448_v33 = vadd.f32 %v2395_v34, %v1371_v28  ;;  %v1374_v62 = vpop.xlane.xlu1 %1373 }
 0x324   : > { %1603 = vst.msk [vmem:[%s2410_s24 + $0x30] sm:$0xff] %vm1596_vm3, %v1570_v29  ;;  %v1571_v35 = vmul.f32 0.5, %v1539_v30  ;;  %v1536_v37 = vadd.f32 1.0, %v1990_v32  ;;  %2003 = vtanh.f32 %v1483_v31  ;;  %v1449_v38 = vadd.f32 %v2395_v34, %v1374_v62 }
 0x325   : > { %v1992_v39 = vpop.eup %1991  ;;  %v1480_v40 = vmul.f32 0.5, %v1448_v33  ;;  %v1389_v41 = vpop.xlane.xlu0 %1388 }
 0x326   : > { %1604 = vst.msk [vmem:[%s2410_s24 + $0x38] sm:$0xff] %vm1596_vm3, %v1571_v35  ;;  %v1568_v13 = vmul.f32 0.5, %v1536_v37  ;;  %v1537_v42 = vadd.f32 1.0, %v1992_v39  ;;  %v1481_v43 = vmul.f32 0.5, %v1449_v38  ;;  %v1454_v44 = vadd.f32 %v2395_v34, %v1389_v41 }
 0x327   : > { %v1994_v46 = vpop.eup %1993  ;;  %2005 = vtanh.f32 %v1480_v40  ;;  %v1392_v47 = vpop.xlane.xlu1 %1391 }
 0x328   : > { %1601 = vst.msk [vmem:[%s2410_s24 + $0x20] sm:$0xff] %vm1596_vm3, %v1568_v13  ;;  %v1569_v48 = vmul.f32 0.5, %v1537_v42  ;;  %v1542_v49 = vadd.f32 1.0, %v1994_v46  ;;  %2007 = vtanh.f32 %v1481_v43  ;;  %v1486_v36 = vmul.f32 0.5, %v1454_v44 }
 0x329   : > { %v1455_v50 = vadd.f32 %v2395_v34, %v1392_v47  ;;  %v1383_v45 = vpop.xlane.xlu0 %1382 }
 0x32a   : > { %v1996_v51 = vpop.eup %1995  ;;  %1602 = vst.msk [vmem:[%s2410_s24 + $0x28] sm:$0xff] %vm1596_vm3, %v1569_v48  ;;  %v1574_v52 = vmul.f32 0.5, %v1542_v49  ;;  %2009 = vtanh.f32 %v1486_v36  ;;  %v1452_v53 = vadd.f32 %v2395_v34, %v1383_v45 }
 0x32b   : > { %v1998_v55 = vpop.eup %1997  ;;  %v1543_v56 = vadd.f32 1.0, %v1996_v51  ;;  %v1487_v57 = vmul.f32 0.5, %v1455_v50  ;;  %v1386_v58 = vpop.xlane.xlu1 %1385 }
 0x32c   : > { %1607 = vst.msk [vmem:[%s2410_s24 + $0x50] sm:$0xff] %vm1596_vm3, %v1574_v52  ;;  %v1540_v59 = vadd.f32 1.0, %v1998_v55  ;;  %v1484_v60 = vmul.f32 0.5, %v1452_v53  ;;  %v1453_v61 = vadd.f32 %v2395_v34, %v1386_v58 }
 0x32d   : > { %v2000_v54 = vpop.eup %1999  ;;  %v1575_v63 = vmul.f32 0.5, %v1543_v56  ;;  %2011 = vtanh.f32 %v1487_v57  ;;  %v1401_v0 = vpop.xlane.xlu0 %1400 }
 0x32e   : > { %v1572_v1 = vmul.f32 0.5, %v1540_v59  ;;  %v1541_v2 = vadd.f32 1.0, %v2000_v54  ;;  %2013 = vtanh.f32 %v1484_v60  ;;  %v1485_v3 = vmul.f32 0.5, %v1453_v61 }
 0x32f   : > { %v2002_v4 = vpop.eup %2001  ;;  %1608 = vst.msk [vmem:[%s2410_s24 + $0x58] sm:$0xff] %vm1596_vm3, %v1575_v63  ;;  %v1458_v5 = vadd.f32 %v2395_v34, %v1401_v0  ;;  %v1404_v6 = vpop.xlane.xlu1 %1403 }
 0x330   : > { %1605 = vst.msk [vmem:[%s2410_s24 + $0x40] sm:$0xff] %vm1596_vm3, %v1572_v1  ;;  %v1573_v7 = vmul.f32 0.5, %v1541_v2  ;;  %v1546_v8 = vadd.f32 1.0, %v2002_v4  ;;  %2015 = vtanh.f32 %v1485_v3  ;;  %v1459_v9 = vadd.f32 %v2395_v34, %v1404_v6 }
 0x331   : > { %v2004_v10 = vpop.eup %2003  ;;  %v1490_v11 = vmul.f32 0.5, %v1458_v5  ;;  %v1395_v12 = vpop.xlane.xlu0 %1394 }
 0x332   : > { %1606 = vst.msk [vmem:[%s2410_s24 + $0x48] sm:$0xff] %vm1596_vm3, %v1573_v7  ;;  %v1578_v14 = vmul.f32 0.5, %v1546_v8  ;;  %v1547_v15 = vadd.f32 1.0, %v2004_v10  ;;  %v1491_v27 = vmul.f32 0.5, %v1459_v9  ;;  %v1456_v16 = vadd.f32 %v2395_v34, %v1395_v12 }
 0x333   : > { %2017 = vtanh.f32 %v1490_v11  ;;  %v1398_v17 = vpop.xlane.xlu1 %1397 }
 0x334   : > { %v2006_v18 = vpop.eup %2005  ;;  %1611 = vst.msk [vmem:[%s2410_s24 + $0x70] sm:$0xff] %vm1596_vm3, %v1578_v14  ;;  %v1579_v19 = vmul.f32 0.5, %v1547_v15  ;;  %2019 = vtanh.f32 %v1491_v27  ;;  %v1488_v20 = vmul.f32 0.5, %v1456_v16  ;;  %v1457_v21 = vadd.f32 %v2395_v34, %v1398_v17 }
 0x335   : > { %v2008_v22 = vpop.eup %2007  ;;  %v1544_v23 = vadd.f32 1.0, %v2006_v18  ;;  %v1413_v24 = vpop.xlane.xlu0 %1412 }
 0x336   : > { %1612 = vst.msk [vmem:[%s2410_s24 + $0x78] sm:$0xff] %vm1596_vm3, %v1579_v19  ;;  %v1545_v25 = vadd.f32 1.0, %v2008_v22  ;;  %2021 = vtanh.f32 %v1488_v20  ;;  %v1489_v26 = vmul.f32 0.5, %v1457_v21  ;;  %v1462_v28 = vadd.f32 %v2395_v34, %v1413_v24 }
 0x337   : > { %v2010_v29 = vpop.eup %2009  ;;  %v1576_v30 = vmul.f32 0.5, %v1544_v23  ;;  %v1416_v31 = vpop.xlane.xlu1 %1415 }
 0x338   : > { %v1577_v32 = vmul.f32 0.5, %v1545_v25  ;;  %v1550_v33 = vadd.f32 1.0, %v2010_v29  ;;  %2023 = vtanh.f32 %v1489_v26  ;;  %v1494_v62 = vmul.f32 0.5, %v1462_v28 }
 0x339   : > { %1609 = vst.msk [vmem:[%s2410_s24 + $0x60] sm:$0xff] %vm1596_vm3, %v1576_v30  ;;  %v1463_v35 = vadd.f32 %v2395_v34, %v1416_v31  ;;  %v1407_v37 = vpop.xlane.xlu0 %1406 }
 0x33a   : > { %v2012_v38 = vpop.eup %2011  ;;  %1610 = vst.msk [vmem:[%s2410_s24 + $0x68] sm:$0xff] %vm1596_vm3, %v1577_v32  ;;  %v1582_v39 = vmul.f32 0.5, %v1550_v33  ;;  %2025 = vtanh.f32 %v1494_v62  ;;  %v1460_v40 = vadd.f32 %v2395_v34, %v1407_v37 }
 0x33b   : > { %v2014_v41 = vpop.eup %2013  ;;  %v1551_v13 = vadd.f32 1.0, %v2012_v38  ;;  %v1495_v42 = vmul.f32 0.5, %v1463_v35  ;;  %v1410_v43 = vpop.xlane.xlu1 %1409 }
 0x33c   : > { %1615 = vst.msk [vmem:[%s2410_s24 + $0x90] sm:$0xff] %vm1596_vm3, %v1582_v39  ;;  %v1548_v44 = vadd.f32 1.0, %v2014_v41  ;;  %v1492_v46 = vmul.f32 0.5, %v1460_v40  ;;  %v1461_v47 = vadd.f32 %v2395_v34, %v1410_v43 }
 0x33d   : > { %v2016_v48 = vpop.eup %2015  ;;  %v1583_v49 = vmul.f32 0.5, %v1551_v13  ;;  %2027 = vtanh.f32 %v1495_v42  ;;  %v1419_v36 = vpop.xlane.xlu0 %1418 }
 0x33e   : > { %v1580_v50 = vmul.f32 0.5, %v1548_v44  ;;  %v1549_v45 = vadd.f32 1.0, %v2016_v48  ;;  %2029 = vtanh.f32 %v1492_v46  ;;  %v1493_v51 = vmul.f32 0.5, %v1461_v47 }
 0x33f   : > { %1616 = vst.msk [vmem:[%s2410_s24 + $0x98] sm:$0xff] %vm1596_vm3, %v1583_v49  ;;  %v1464_v52 = vadd.f32 %v2395_v34, %v1419_v36 }
 0x340   : > { %v2018_v53 = vpop.eup %2017  ;;  %1613 = vst.msk [vmem:[%s2410_s24 + $0x80] sm:$0xff] %vm1596_vm3, %v1580_v50  ;;  %v1581_v55 = vmul.f32 0.5, %v1549_v45  ;;  %2031 = vtanh.f32 %v1493_v51 }
 0x341   : > { %v2020_v56 = vpop.eup %2019  ;;  %v1554_v57 = vadd.f32 1.0, %v2018_v53  ;;  %v1496_v58 = vmul.f32 0.5, %v1464_v52  ;;  %v1422_v59 = vpop.xlane.xlu1 %1421 }
 0x342   : > { %v1425_v60 = vpop.xlane.xlu0 %1424  ;;  %1614 = vst.msk [vmem:[%s2410_s24 + $0x88] sm:$0xff] %vm1596_vm3, %v1581_v55  ;;  %v1555_v61 = vadd.f32 1.0, %v2020_v56  ;;  %v1465_v54 = vadd.f32 %v2395_v34, %v1422_v59 }
 0x343   : > { %v1466_v63 = vadd.f32 %v2395_v34, %v1425_v60  ;;  %v2022_v0 = vpop.eup %2021  ;;  %v1586_v1 = vmul.f32 0.5, %v1554_v57  ;;  %2033 = vtanh.f32 %v1496_v58 }
 0x344   : > { %v1587_v2 = vmul.f32 0.5, %v1555_v61  ;;  %v1552_v3 = vadd.f32 1.0, %v2022_v0  ;;  %v1497_v4 = vmul.f32 0.5, %v1465_v54 }
 0x345   : > { %v1498_v5 = vmul.f32 0.5, %v1466_v63  ;;  %v2024_v6 = vpop.eup %2023  ;;  %1619 = vst.msk [vmem:[%s2410_s24 + $0xb0] sm:$0xff] %vm1596_vm3, %v1586_v1  ;;  %v1428_v7 = vpop.xlane.xlu1 %1427 }
 0x346   : > { %1620 = vst.msk [vmem:[%s2410_s24 + $0xb8] sm:$0xff] %vm1596_vm3, %v1587_v2  ;;  %v1584_v8 = vmul.f32 0.5, %v1552_v3  ;;  %v1553_v9 = vadd.f32 1.0, %v2024_v6  ;;  %2035 = vtanh.f32 %v1497_v4  ;;  %v1467_v10 = vadd.f32 %v2395_v34, %v1428_v7 }
 0x347   : > { %v2026_v11 = vpop.eup %2025  ;;  %2037 = vtanh.f32 %v1498_v5 }
 0x348   : > { %1617 = vst.msk [vmem:[%s2410_s24 + $0xa0] sm:$0xff] %vm1596_vm3, %v1584_v8  ;;  %v1585_v12 = vmul.f32 0.5, %v1553_v9  ;;  %v1558_v14 = vadd.f32 1.0, %v2026_v11  ;;  %v1499_v15 = vmul.f32 0.5, %v1467_v10 }
 0x34a   : > { %v2028_v27 = vpop.eup %2027  ;;  %1618 = vst.msk [vmem:[%s2410_s24 + $0xa8] sm:$0xff] %vm1596_vm3, %v1585_v12  ;;  %v1590_v16 = vmul.f32 0.5, %v1558_v14  ;;  %2039 = vtanh.f32 %v1499_v15 }
 0x34b   : > { %v2030_v17 = vpop.eup %2029  ;;  %v1559_v18 = vadd.f32 1.0, %v2028_v27 }
 0x34c   : > { %1623 = vst.msk [vmem:[%s2410_s24 + $0xd0] sm:$0xff] %vm1596_vm3, %v1590_v16  ;;  %v1556_v34 = vadd.f32 1.0, %v2030_v17 }
 0x34d   : > { %v2032_v19 = vpop.eup %2031  ;;  %v1591_v20 = vmul.f32 0.5, %v1559_v18 }
 0x34e   : > { %v1588_v21 = vmul.f32 0.5, %v1556_v34  ;;  %v1557_v22 = vadd.f32 1.0, %v2032_v19 }
 0x34f   : > { %1624 = vst.msk [vmem:[%s2410_s24 + $0xd8] sm:$0xff] %vm1596_vm3, %v1591_v20 }
 0x350   : > { %v2034_v23 = vpop.eup %2033  ;;  %1621 = vst.msk [vmem:[%s2410_s24 + $0xc0] sm:$0xff] %vm1596_vm3, %v1588_v21  ;;  %v1589_v24 = vmul.f32 0.5, %v1557_v22 }
 0x351   : > { %v1560_v25 = vadd.f32 1.0, %v2034_v23 }
 0x352   : > { %1622 = vst.msk [vmem:[%s2410_s24 + $0xc8] sm:$0xff] %vm1596_vm3, %v1589_v24 }
 0x353   : > { %v2036_v26 = vpop.eup %2035  ;;  %v1592_v28 = vmul.f32 0.5, %v1560_v25 }
 0x354   : > { %v2038_v29 = vpop.eup %2037  ;;  %v1561_v30 = vadd.f32 1.0, %v2036_v26 }
 0x355   : > { %1625 = vst.msk [vmem:[%s2410_s24 + $0xe0] sm:$0xff] %vm1596_vm3, %v1592_v28  ;;  %v1562_v31 = vadd.f32 1.0, %v2038_v29 }
 0x356   : > { %v1593_v32 = vmul.f32 0.5, %v1561_v30 }
 0x357   : > { %v2040_v33 = vpop.eup %2039  ;;  %v1594_v62 = vmul.f32 0.5, %v1562_v31 }
 0x358   : > { %1626 = vst.msk [vmem:[%s2410_s24 + $0xe8] sm:$0xff] %vm1596_vm3, %v1593_v32  ;;  %v1563_v35 = vadd.f32 1.0, %v2040_v33 }
 0x359   : > { %1627 = vst.msk [vmem:[%s2410_s24 + $0xf0] sm:$0xff] %vm1596_vm3, %v1594_v62 }
 0x35a   : > { %v1595_v37 = vmul.f32 0.5, %v1563_v35 }
 0x35c   : > { %1628 = vst.msk [vmem:[%s2410_s24 + $0xf8] sm:$0xff] %vm1596_vm3, %v1595_v37 }
 0x35d PF: > { %s21_s11 = sadd.s32 1, %s2047_s11  }
 0x35e   : > { %p18_p4 = scmp.ge.s32.totalorder %s21_s11, 4  }
 0x360   :  { %20 = sbr.rel (!%p18_p4) target bundleno = 3 (0x3), region = 86 }

</bundles_post_ra>
